<compile_context>
chip_gen: v6e
topology: v6e:2x2x1
jax: 0.10.0
libtpu: 0.0.40
codegen_flags: <defaults>
</compile_context>

<pallas_src>
import functools

import jax
import jax.numpy as jnp
from jax.experimental import pallas as pl
from jax.experimental.pallas import tpu as pltpu

F32 = jnp.float32


# ---------------------------------------------------------------------------
# Fused SAT kernel: sigmoid(conv_KxK(max over channels)) for one batch element
# ---------------------------------------------------------------------------
def _sat_kernel(x_ref, w_ref, o_ref, pad_ref, *, H, W, K):
    """x_ref: (1, C, H, W) VMEM | w_ref: (K*K,) SMEM | o_ref: (1, 1, H, W) VMEM
    pad_ref: (H+K-1, W+K-1) VMEM scratch holding the zero-padded max map."""
    P = K // 2

    # Channel-wise max -> (H, W): elementwise VPU max over the C planes.
    m = jnp.max(x_ref[0].astype(F32), axis=0)

    # Zero-padded max map in VMEM scratch. Scratch persists across grid steps
    # (and is per-core under "parallel" semantics), so re-zero every step.
    pad_ref[...] = jnp.zeros_like(pad_ref)
    pad_ref[P:P + H, P:P + W] = m

    # KxK conv as K*K shifted-tap MACs; tap weights are scalars read from SMEM.
    acc = jnp.zeros((H, W), F32)
    for di in range(K):
        for dj in range(K):
            acc = acc + w_ref[di * K + dj] * pad_ref[di:di + H, dj:dj + W]

    o_ref[0, 0] = jax.nn.sigmoid(acc).astype(o_ref.dtype)


def sat_forward(x_nchw, conv_w):
    """SAT forward. x: (B, C, H, W), conv_w: (1, 1, K, K) -> (B, 1, H, W)."""
    B, C, H, W = x_nchw.shape
    K = conv_w.shape[-1]
    w_flat = conv_w.reshape(K * K).astype(F32)
    kernel = functools.partial(_sat_kernel, H=H, W=W, K=K)
    # TODO(synk): for production resolutions tile over H with a (K//2)-row halo
    # instead of one (C, H, W) block per batch (v7x has half the VMEM of v6e).
    return pl.pallas_call(
        kernel,
        out_shape=jax.ShapeDtypeStruct((B, 1, H, W), x_nchw.dtype),
        grid=(B,),
        in_specs=[
            pl.BlockSpec((1, C, H, W), lambda b: (b, 0, 0, 0)),
            pl.BlockSpec(memory_space=pltpu.MemorySpace.SMEM),
        ],
        out_specs=pl.BlockSpec((1, 1, H, W), lambda b: (b, 0, 0, 0)),
        scratch_shapes=[pltpu.VMEM((H + K - 1, W + K - 1), F32)],
        compiler_params=pltpu.CompilerParams(
            dimension_semantics=("parallel",)),
    )(x_nchw.astype(F32), w_flat)


# ---------------------------------------------------------------------------
# Pure-JAX reference (same tap ordering -> near bit-identical)
# ---------------------------------------------------------------------------
def _sat_reference(x, conv_w):
    B, C, H, W = x.shape
    K = conv_w.shape[-1]
    P = K // 2
    m = jnp.max(x, axis=1, keepdims=True)                        # (B,1,H,W)
    mp = jnp.pad(m, ((0, 0), (0, 0), (P, P), (P, P)))
    acc = jnp.zeros((B, 1, H, W), F32)
    for di in range(K):
        for dj in range(K):
            acc = acc + conv_w[0, 0, di, dj] * mp[:, :, di:di + H, dj:dj + W]
    return jax.nn.sigmoid(acc)


if __name__ == "__main__":
    B, C, H, W, K = 2, 8, 16, 16, 7
    key = jax.random.PRNGKey(0)
    kx, kw = jax.random.split(key)
    x = jax.random.normal(kx, (B, C, H, W), dtype=F32)
    conv_w = (0.2 * jax.random.normal(kw, (1, 1, K, K))).astype(F32)

    fwd = jax.jit(sat_forward)
    out = jax.block_until_ready(fwd(x, conv_w))
    assert out.shape == (B, 1, H, W), out.shape
    assert bool(jnp.all(jnp.isfinite(out)))

    ref = _sat_reference(x, conv_w)
    err = float(jnp.max(jnp.abs(out - ref)))
    assert err < 1e-4, f"max abs err {err}"
    print("KERNEL_OK")
</pallas_src>

<mosaic_0001>
module attributes {stable_mosaic.version = 11 : i64} {
  func.func @_sat_kernel(%arg0: i32, %arg1: memref<1x8x16x16xf32, #tpu.memory_space<vmem>>, %arg2: memref<49xf32, #tpu.memory_space<smem>>, %arg3: memref<1x1x16x16xf32, #tpu.memory_space<vmem>>, %arg4: memref<22x22xf32, #tpu.memory_space<vmem>>) attributes {dimension_semantics = [#tpu.dimension_semantics<parallel>], iteration_bounds = array<i64: 2>, scalar_prefetch = 0 : i64, scratch_operands = 1 : i64, tpu.core_type = #tpu.core_type<tc>, window_params = [{transform_indices = @transform_0, window_bounds = array<i64: 1, 8, 16, 16>}, {transform_indices = @transform_1, window_bounds = array<i64: 49>}, {transform_indices = @transform_2, window_bounds = array<i64: 1, 1, 16, 16>}]} {
    %c0 = arith.constant 0 : index
    %c0_0 = arith.constant 0 : index
    %c0_1 = arith.constant 0 : index
    %c0_2 = arith.constant 0 : index
    %0 = vector.load %arg1[%c0, %c0_0, %c0_1, %c0_2] : memref<1x8x16x16xf32, #tpu.memory_space<vmem>>, vector<1x8x16x16xf32>
    %1 = vector.shape_cast %0 : vector<1x8x16x16xf32> to vector<8x16x16xf32>
    %cst = arith.constant dense<0xFF800000> : vector<16x16xf32>
    %2 = vector.multi_reduction <maximumf>, %1, %cst [0] : vector<8x16x16xf32> to vector<16x16xf32>
    %cst_3 = arith.constant 0.000000e+00 : f32
    %3 = vector.broadcast %cst_3 : f32 to vector<22x22xf32>
    %c0_4 = arith.constant 0 : index
    %c0_5 = arith.constant 0 : index
    %4 = vector.load %arg4[%c0_4, %c0_5] : memref<22x22xf32, #tpu.memory_space<vmem>>, vector<22x22xf32>
    tpu.vector_store %arg4[%c0_4, %c0_5], %3 {strides = array<i32>} : memref<22x22xf32, #tpu.memory_space<vmem>>, vector<22x22xf32>,
    %c3 = arith.constant 3 : index
    %c3_6 = arith.constant 3 : index
    %5 = vector.load %arg4[%c3, %c3_6] : memref<22x22xf32, #tpu.memory_space<vmem>>, vector<16x16xf32>
    tpu.vector_store %arg4[%c3, %c3_6], %2 {strides = array<i32>} : memref<22x22xf32, #tpu.memory_space<vmem>>, vector<16x16xf32>,
    %cst_7 = arith.constant 0.000000e+00 : f32
    %6 = vector.broadcast %cst_7 : f32 to vector<16x16xf32>
    %c0_8 = arith.constant 0 : index
    %7 = memref.load %arg2[%c0_8] : memref<49xf32, #tpu.memory_space<smem>>
    %c0_9 = arith.constant 0 : index
    %c0_10 = arith.constant 0 : index
    %8 = vector.load %arg4[%c0_9, %c0_10] : memref<22x22xf32, #tpu.memory_space<vmem>>, vector<16x16xf32>
    %9 = vector.broadcast %7 : f32 to vector<16x16xf32>
    %10 = arith.mulf %9, %8 : vector<16x16xf32>
    %11 = arith.addf %6, %10 : vector<16x16xf32>
    %c1 = arith.constant 1 : index
    %12 = memref.load %arg2[%c1] : memref<49xf32, #tpu.memory_space<smem>>
    %c0_11 = arith.constant 0 : index
    %c1_12 = arith.constant 1 : index
    %13 = vector.load %arg4[%c0_11, %c1_12] : memref<22x22xf32, #tpu.memory_space<vmem>>, vector<16x16xf32>
    %14 = vector.broadcast %12 : f32 to vector<16x16xf32>
    %15 = arith.mulf %14, %13 : vector<16x16xf32>
    %16 = arith.addf %11, %15 : vector<16x16xf32>
    %c2 = arith.constant 2 : index
    %17 = memref.load %arg2[%c2] : memref<49xf32, #tpu.memory_space<smem>>
    %c0_13 = arith.constant 0 : index
    %c2_14 = arith.constant 2 : index
    %18 = vector.load %arg4[%c0_13, %c2_14] : memref<22x22xf32, #tpu.memory_space<vmem>>, vector<16x16xf32>
    %19 = vector.broadcast %17 : f32 to vector<16x16xf32>
    %20 = arith.mulf %19, %18 : vector<16x16xf32>
    %21 = arith.addf %16, %20 : vector<16x16xf32>
    %c3_15 = arith.constant 3 : index
    %22 = memref.load %arg2[%c3_15] : memref<49xf32, #tpu.memory_space<smem>>
    %c0_16 = arith.constant 0 : index
    %c3_17 = arith.constant 3 : index
    %23 = vector.load %arg4[%c0_16, %c3_17] : memref<22x22xf32, #tpu.memory_space<vmem>>, vector<16x16xf32>
    %24 = vector.broadcast %22 : f32 to vector<16x16xf32>
    %25 = arith.mulf %24, %23 : vector<16x16xf32>
    %26 = arith.addf %21, %25 : vector<16x16xf32>
    %c4 = arith.constant 4 : index
    %27 = memref.load %arg2[%c4] : memref<49xf32, #tpu.memory_space<smem>>
    %c0_18 = arith.constant 0 : index
    %c4_19 = arith.constant 4 : index
    %28 = vector.load %arg4[%c0_18, %c4_19] : memref<22x22xf32, #tpu.memory_space<vmem>>, vector<16x16xf32>
    %29 = vector.broadcast %27 : f32 to vector<16x16xf32>
    %30 = arith.mulf %29, %28 : vector<16x16xf32>
    %31 = arith.addf %26, %30 : vector<16x16xf32>
    %c5 = arith.constant 5 : index
    %32 = memref.load %arg2[%c5] : memref<49xf32, #tpu.memory_space<smem>>
    %c0_20 = arith.constant 0 : index
    %c5_21 = arith.constant 5 : index
    %33 = vector.load %arg4[%c0_20, %c5_21] : memref<22x22xf32, #tpu.memory_space<vmem>>, vector<16x16xf32>
    %34 = vector.broadcast %32 : f32 to vector<16x16xf32>
    %35 = arith.mulf %34, %33 : vector<16x16xf32>
    %36 = arith.addf %31, %35 : vector<16x16xf32>
    %c6 = arith.constant 6 : index
    %37 = memref.load %arg2[%c6] : memref<49xf32, #tpu.memory_space<smem>>
    %c0_22 = arith.constant 0 : index
    %c6_23 = arith.constant 6 : index
    %38 = vector.load %arg4[%c0_22, %c6_23] : memref<22x22xf32, #tpu.memory_space<vmem>>, vector<16x16xf32>
    %39 = vector.broadcast %37 : f32 to vector<16x16xf32>
    %40 = arith.mulf %39, %38 : vector<16x16xf32>
    %41 = arith.addf %36, %40 : vector<16x16xf32>
    %c7 = arith.constant 7 : index
    %42 = memref.load %arg2[%c7] : memref<49xf32, #tpu.memory_space<smem>>
    %c1_24 = arith.constant 1 : index
    %c0_25 = arith.constant 0 : index
    %43 = vector.load %arg4[%c1_24, %c0_25] : memref<22x22xf32, #tpu.memory_space<vmem>>, vector<16x16xf32>
    %44 = vector.broadcast %42 : f32 to vector<16x16xf32>
    %45 = arith.mulf %44, %43 : vector<16x16xf32>
    %46 = arith.addf %41, %45 : vector<16x16xf32>
    %c8 = arith.constant 8 : index
    %47 = memref.load %arg2[%c8] : memref<49xf32, #tpu.memory_space<smem>>
    %c1_26 = arith.constant 1 : index
    %c1_27 = arith.constant 1 : index
    %48 = vector.load %arg4[%c1_26, %c1_27] : memref<22x22xf32, #tpu.memory_space<vmem>>, vector<16x16xf32>
    %49 = vector.broadcast %47 : f32 to vector<16x16xf32>
    %50 = arith.mulf %49, %48 : vector<16x16xf32>
    %51 = arith.addf %46, %50 : vector<16x16xf32>
    %c9 = arith.constant 9 : index
    %52 = memref.load %arg2[%c9] : memref<49xf32, #tpu.memory_space<smem>>
    %c1_28 = arith.constant 1 : index
    %c2_29 = arith.constant 2 : index
    %53 = vector.load %arg4[%c1_28, %c2_29] : memref<22x22xf32, #tpu.memory_space<vmem>>, vector<16x16xf32>
    %54 = vector.broadcast %52 : f32 to vector<16x16xf32>
    %55 = arith.mulf %54, %53 : vector<16x16xf32>
    %56 = arith.addf %51, %55 : vector<16x16xf32>
    %c10 = arith.constant 10 : index
    %57 = memref.load %arg2[%c10] : memref<49xf32, #tpu.memory_space<smem>>
    %c1_30 = arith.constant 1 : index
    %c3_31 = arith.constant 3 : index
    %58 = vector.load %arg4[%c1_30, %c3_31] : memref<22x22xf32, #tpu.memory_space<vmem>>, vector<16x16xf32>
    %59 = vector.broadcast %57 : f32 to vector<16x16xf32>
    %60 = arith.mulf %59, %58 : vector<16x16xf32>
    %61 = arith.addf %56, %60 : vector<16x16xf32>
    %c11 = arith.constant 11 : index
    %62 = memref.load %arg2[%c11] : memref<49xf32, #tpu.memory_space<smem>>
    %c1_32 = arith.constant 1 : index
    %c4_33 = arith.constant 4 : index
    %63 = vector.load %arg4[%c1_32, %c4_33] : memref<22x22xf32, #tpu.memory_space<vmem>>, vector<16x16xf32>
    %64 = vector.broadcast %62 : f32 to vector<16x16xf32>
    %65 = arith.mulf %64, %63 : vector<16x16xf32>
    %66 = arith.addf %61, %65 : vector<16x16xf32>
    %c12 = arith.constant 12 : index
    %67 = memref.load %arg2[%c12] : memref<49xf32, #tpu.memory_space<smem>>
    %c1_34 = arith.constant 1 : index
    %c5_35 = arith.constant 5 : index
    %68 = vector.load %arg4[%c1_34, %c5_35] : memref<22x22xf32, #tpu.memory_space<vmem>>, vector<16x16xf32>
    %69 = vector.broadcast %67 : f32 to vector<16x16xf32>
    %70 = arith.mulf %69, %68 : vector<16x16xf32>
    %71 = arith.addf %66, %70 : vector<16x16xf32>
    %c13 = arith.constant 13 : index
    %72 = memref.load %arg2[%c13] : memref<49xf32, #tpu.memory_space<smem>>
    %c1_36 = arith.constant 1 : index
    %c6_37 = arith.constant 6 : index
    %73 = vector.load %arg4[%c1_36, %c6_37] : memref<22x22xf32, #tpu.memory_space<vmem>>, vector<16x16xf32>
    %74 = vector.broadcast %72 : f32 to vector<16x16xf32>
    %75 = arith.mulf %74, %73 : vector<16x16xf32>
    %76 = arith.addf %71, %75 : vector<16x16xf32>
    %c14 = arith.constant 14 : index
    %77 = memref.load %arg2[%c14] : memref<49xf32, #tpu.memory_space<smem>>
    %c2_38 = arith.constant 2 : index
    %c0_39 = arith.constant 0 : index
    %78 = vector.load %arg4[%c2_38, %c0_39] : memref<22x22xf32, #tpu.memory_space<vmem>>, vector<16x16xf32>
    %79 = vector.broadcast %77 : f32 to vector<16x16xf32>
    %80 = arith.mulf %79, %78 : vector<16x16xf32>
    %81 = arith.addf %76, %80 : vector<16x16xf32>
    %c15 = arith.constant 15 : index
    %82 = memref.load %arg2[%c15] : memref<49xf32, #tpu.memory_space<smem>>
    %c2_40 = arith.constant 2 : index
    %c1_41 = arith.constant 1 : index
    %83 = vector.load %arg4[%c2_40, %c1_41] : memref<22x22xf32, #tpu.memory_space<vmem>>, vector<16x16xf32>
    %84 = vector.broadcast %82 : f32 to vector<16x16xf32>
    %85 = arith.mulf %84, %83 : vector<16x16xf32>
    %86 = arith.addf %81, %85 : vector<16x16xf32>
    %c16 = arith.constant 16 : index
    %87 = memref.load %arg2[%c16] : memref<49xf32, #tpu.memory_space<smem>>
    %c2_42 = arith.constant 2 : index
    %c2_43 = arith.constant 2 : index
    %88 = vector.load %arg4[%c2_42, %c2_43] : memref<22x22xf32, #tpu.memory_space<vmem>>, vector<16x16xf32>
    %89 = vector.broadcast %87 : f32 to vector<16x16xf32>
    %90 = arith.mulf %89, %88 : vector<16x16xf32>
    %91 = arith.addf %86, %90 : vector<16x16xf32>
    %c17 = arith.constant 17 : index
    %92 = memref.load %arg2[%c17] : memref<49xf32, #tpu.memory_space<smem>>
    %c2_44 = arith.constant 2 : index
    %c3_45 = arith.constant 3 : index
    %93 = vector.load %arg4[%c2_44, %c3_45] : memref<22x22xf32, #tpu.memory_space<vmem>>, vector<16x16xf32>
    %94 = vector.broadcast %92 : f32 to vector<16x16xf32>
    %95 = arith.mulf %94, %93 : vector<16x16xf32>
    %96 = arith.addf %91, %95 : vector<16x16xf32>
    %c18 = arith.constant 18 : index
    %97 = memref.load %arg2[%c18] : memref<49xf32, #tpu.memory_space<smem>>
    %c2_46 = arith.constant 2 : index
    %c4_47 = arith.constant 4 : index
    %98 = vector.load %arg4[%c2_46, %c4_47] : memref<22x22xf32, #tpu.memory_space<vmem>>, vector<16x16xf32>
    %99 = vector.broadcast %97 : f32 to vector<16x16xf32>
    %100 = arith.mulf %99, %98 : vector<16x16xf32>
    %101 = arith.addf %96, %100 : vector<16x16xf32>
    %c19 = arith.constant 19 : index
    %102 = memref.load %arg2[%c19] : memref<49xf32, #tpu.memory_space<smem>>
    %c2_48 = arith.constant 2 : index
    %c5_49 = arith.constant 5 : index
    %103 = vector.load %arg4[%c2_48, %c5_49] : memref<22x22xf32, #tpu.memory_space<vmem>>, vector<16x16xf32>
    %104 = vector.broadcast %102 : f32 to vector<16x16xf32>
    %105 = arith.mulf %104, %103 : vector<16x16xf32>
    %106 = arith.addf %101, %105 : vector<16x16xf32>
    %c20 = arith.constant 20 : index
    %107 = memref.load %arg2[%c20] : memref<49xf32, #tpu.memory_space<smem>>
    %c2_50 = arith.constant 2 : index
    %c6_51 = arith.constant 6 : index
    %108 = vector.load %arg4[%c2_50, %c6_51] : memref<22x22xf32, #tpu.memory_space<vmem>>, vector<16x16xf32>
    %109 = vector.broadcast %107 : f32 to vector<16x16xf32>
    %110 = arith.mulf %109, %108 : vector<16x16xf32>
    %111 = arith.addf %106, %110 : vector<16x16xf32>
    %c21 = arith.constant 21 : index
    %112 = memref.load %arg2[%c21] : memref<49xf32, #tpu.memory_space<smem>>
    %c3_52 = arith.constant 3 : index
    %c0_53 = arith.constant 0 : index
    %113 = vector.load %arg4[%c3_52, %c0_53] : memref<22x22xf32, #tpu.memory_space<vmem>>, vector<16x16xf32>
    %114 = vector.broadcast %112 : f32 to vector<16x16xf32>
    %115 = arith.mulf %114, %113 : vector<16x16xf32>
    %116 = arith.addf %111, %115 : vector<16x16xf32>
    %c22 = arith.constant 22 : index
    %117 = memref.load %arg2[%c22] : memref<49xf32, #tpu.memory_space<smem>>
    %c3_54 = arith.constant 3 : index
    %c1_55 = arith.constant 1 : index
    %118 = vector.load %arg4[%c3_54, %c1_55] : memref<22x22xf32, #tpu.memory_space<vmem>>, vector<16x16xf32>
    %119 = vector.broadcast %117 : f32 to vector<16x16xf32>
    %120 = arith.mulf %119, %118 : vector<16x16xf32>
    %121 = arith.addf %116, %120 : vector<16x16xf32>
    %c23 = arith.constant 23 : index
    %122 = memref.load %arg2[%c23] : memref<49xf32, #tpu.memory_space<smem>>
    %c3_56 = arith.constant 3 : index
    %c2_57 = arith.constant 2 : index
    %123 = vector.load %arg4[%c3_56, %c2_57] : memref<22x22xf32, #tpu.memory_space<vmem>>, vector<16x16xf32>
    %124 = vector.broadcast %122 : f32 to vector<16x16xf32>
    %125 = arith.mulf %124, %123 : vector<16x16xf32>
    %126 = arith.addf %121, %125 : vector<16x16xf32>
    %c24 = arith.constant 24 : index
    %127 = memref.load %arg2[%c24] : memref<49xf32, #tpu.memory_space<smem>>
    %c3_58 = arith.constant 3 : index
    %c3_59 = arith.constant 3 : index
    %128 = vector.load %arg4[%c3_58, %c3_59] : memref<22x22xf32, #tpu.memory_space<vmem>>, vector<16x16xf32>
    %129 = vector.broadcast %127 : f32 to vector<16x16xf32>
    %130 = arith.mulf %129, %128 : vector<16x16xf32>
    %131 = arith.addf %126, %130 : vector<16x16xf32>
    %c25 = arith.constant 25 : index
    %132 = memref.load %arg2[%c25] : memref<49xf32, #tpu.memory_space<smem>>
    %c3_60 = arith.constant 3 : index
    %c4_61 = arith.constant 4 : index
    %133 = vector.load %arg4[%c3_60, %c4_61] : memref<22x22xf32, #tpu.memory_space<vmem>>, vector<16x16xf32>
    %134 = vector.broadcast %132 : f32 to vector<16x16xf32>
    %135 = arith.mulf %134, %133 : vector<16x16xf32>
    %136 = arith.addf %131, %135 : vector<16x16xf32>
    %c26 = arith.constant 26 : index
    %137 = memref.load %arg2[%c26] : memref<49xf32, #tpu.memory_space<smem>>
    %c3_62 = arith.constant 3 : index
    %c5_63 = arith.constant 5 : index
    %138 = vector.load %arg4[%c3_62, %c5_63] : memref<22x22xf32, #tpu.memory_space<vmem>>, vector<16x16xf32>
    %139 = vector.broadcast %137 : f32 to vector<16x16xf32>
    %140 = arith.mulf %139, %138 : vector<16x16xf32>
    %141 = arith.addf %136, %140 : vector<16x16xf32>
    %c27 = arith.constant 27 : index
    %142 = memref.load %arg2[%c27] : memref<49xf32, #tpu.memory_space<smem>>
    %c3_64 = arith.constant 3 : index
    %c6_65 = arith.constant 6 : index
    %143 = vector.load %arg4[%c3_64, %c6_65] : memref<22x22xf32, #tpu.memory_space<vmem>>, vector<16x16xf32>
    %144 = vector.broadcast %142 : f32 to vector<16x16xf32>
    %145 = arith.mulf %144, %143 : vector<16x16xf32>
    %146 = arith.addf %141, %145 : vector<16x16xf32>
    %c28 = arith.constant 28 : index
    %147 = memref.load %arg2[%c28] : memref<49xf32, #tpu.memory_space<smem>>
    %c4_66 = arith.constant 4 : index
    %c0_67 = arith.constant 0 : index
    %148 = vector.load %arg4[%c4_66, %c0_67] : memref<22x22xf32, #tpu.memory_space<vmem>>, vector<16x16xf32>
    %149 = vector.broadcast %147 : f32 to vector<16x16xf32>
    %150 = arith.mulf %149, %148 : vector<16x16xf32>
    %151 = arith.addf %146, %150 : vector<16x16xf32>
    %c29 = arith.constant 29 : index
    %152 = memref.load %arg2[%c29] : memref<49xf32, #tpu.memory_space<smem>>
    %c4_68 = arith.constant 4 : index
    %c1_69 = arith.constant 1 : index
    %153 = vector.load %arg4[%c4_68, %c1_69] : memref<22x22xf32, #tpu.memory_space<vmem>>, vector<16x16xf32>
    %154 = vector.broadcast %152 : f32 to vector<16x16xf32>
    %155 = arith.mulf %154, %153 : vector<16x16xf32>
    %156 = arith.addf %151, %155 : vector<16x16xf32>
    %c30 = arith.constant 30 : index
    %157 = memref.load %arg2[%c30] : memref<49xf32, #tpu.memory_space<smem>>
    %c4_70 = arith.constant 4 : index
    %c2_71 = arith.constant 2 : index
    %158 = vector.load %arg4[%c4_70, %c2_71] : memref<22x22xf32, #tpu.memory_space<vmem>>, vector<16x16xf32>
    %159 = vector.broadcast %157 : f32 to vector<16x16xf32>
    %160 = arith.mulf %159, %158 : vector<16x16xf32>
    %161 = arith.addf %156, %160 : vector<16x16xf32>
    %c31 = arith.constant 31 : index
    %162 = memref.load %arg2[%c31] : memref<49xf32, #tpu.memory_space<smem>>
    %c4_72 = arith.constant 4 : index
    %c3_73 = arith.constant 3 : index
    %163 = vector.load %arg4[%c4_72, %c3_73] : memref<22x22xf32, #tpu.memory_space<vmem>>, vector<16x16xf32>
    %164 = vector.broadcast %162 : f32 to vector<16x16xf32>
    %165 = arith.mulf %164, %163 : vector<16x16xf32>
    %166 = arith.addf %161, %165 : vector<16x16xf32>
    %c32 = arith.constant 32 : index
    %167 = memref.load %arg2[%c32] : memref<49xf32, #tpu.memory_space<smem>>
    %c4_74 = arith.constant 4 : index
    %c4_75 = arith.constant 4 : index
    %168 = vector.load %arg4[%c4_74, %c4_75] : memref<22x22xf32, #tpu.memory_space<vmem>>, vector<16x16xf32>
    %169 = vector.broadcast %167 : f32 to vector<16x16xf32>
    %170 = arith.mulf %169, %168 : vector<16x16xf32>
    %171 = arith.addf %166, %170 : vector<16x16xf32>
    %c33 = arith.constant 33 : index
    %172 = memref.load %arg2[%c33] : memref<49xf32, #tpu.memory_space<smem>>
    %c4_76 = arith.constant 4 : index
    %c5_77 = arith.constant 5 : index
    %173 = vector.load %arg4[%c4_76, %c5_77] : memref<22x22xf32, #tpu.memory_space<vmem>>, vector<16x16xf32>
    %174 = vector.broadcast %172 : f32 to vector<16x16xf32>
    %175 = arith.mulf %174, %173 : vector<16x16xf32>
    %176 = arith.addf %171, %175 : vector<16x16xf32>
    %c34 = arith.constant 34 : index
    %177 = memref.load %arg2[%c34] : memref<49xf32, #tpu.memory_space<smem>>
    %c4_78 = arith.constant 4 : index
    %c6_79 = arith.constant 6 : index
    %178 = vector.load %arg4[%c4_78, %c6_79] : memref<22x22xf32, #tpu.memory_space<vmem>>, vector<16x16xf32>
    %179 = vector.broadcast %177 : f32 to vector<16x16xf32>
    %180 = arith.mulf %179, %178 : vector<16x16xf32>
    %181 = arith.addf %176, %180 : vector<16x16xf32>
    %c35 = arith.constant 35 : index
    %182 = memref.load %arg2[%c35] : memref<49xf32, #tpu.memory_space<smem>>
    %c5_80 = arith.constant 5 : index
    %c0_81 = arith.constant 0 : index
    %183 = vector.load %arg4[%c5_80, %c0_81] : memref<22x22xf32, #tpu.memory_space<vmem>>, vector<16x16xf32>
    %184 = vector.broadcast %182 : f32 to vector<16x16xf32>
    %185 = arith.mulf %184, %183 : vector<16x16xf32>
    %186 = arith.addf %181, %185 : vector<16x16xf32>
    %c36 = arith.constant 36 : index
    %187 = memref.load %arg2[%c36] : memref<49xf32, #tpu.memory_space<smem>>
    %c5_82 = arith.constant 5 : index
    %c1_83 = arith.constant 1 : index
    %188 = vector.load %arg4[%c5_82, %c1_83] : memref<22x22xf32, #tpu.memory_space<vmem>>, vector<16x16xf32>
    %189 = vector.broadcast %187 : f32 to vector<16x16xf32>
    %190 = arith.mulf %189, %188 : vector<16x16xf32>
    %191 = arith.addf %186, %190 : vector<16x16xf32>
    %c37 = arith.constant 37 : index
    %192 = memref.load %arg2[%c37] : memref<49xf32, #tpu.memory_space<smem>>
    %c5_84 = arith.constant 5 : index
    %c2_85 = arith.constant 2 : index
    %193 = vector.load %arg4[%c5_84, %c2_85] : memref<22x22xf32, #tpu.memory_space<vmem>>, vector<16x16xf32>
    %194 = vector.broadcast %192 : f32 to vector<16x16xf32>
    %195 = arith.mulf %194, %193 : vector<16x16xf32>
    %196 = arith.addf %191, %195 : vector<16x16xf32>
    %c38 = arith.constant 38 : index
    %197 = memref.load %arg2[%c38] : memref<49xf32, #tpu.memory_space<smem>>
    %c5_86 = arith.constant 5 : index
    %c3_87 = arith.constant 3 : index
    %198 = vector.load %arg4[%c5_86, %c3_87] : memref<22x22xf32, #tpu.memory_space<vmem>>, vector<16x16xf32>
    %199 = vector.broadcast %197 : f32 to vector<16x16xf32>
    %200 = arith.mulf %199, %198 : vector<16x16xf32>
    %201 = arith.addf %196, %200 : vector<16x16xf32>
    %c39 = arith.constant 39 : index
    %202 = memref.load %arg2[%c39] : memref<49xf32, #tpu.memory_space<smem>>
    %c5_88 = arith.constant 5 : index
    %c4_89 = arith.constant 4 : index
    %203 = vector.load %arg4[%c5_88, %c4_89] : memref<22x22xf32, #tpu.memory_space<vmem>>, vector<16x16xf32>
    %204 = vector.broadcast %202 : f32 to vector<16x16xf32>
    %205 = arith.mulf %204, %203 : vector<16x16xf32>
    %206 = arith.addf %201, %205 : vector<16x16xf32>
    %c40 = arith.constant 40 : index
    %207 = memref.load %arg2[%c40] : memref<49xf32, #tpu.memory_space<smem>>
    %c5_90 = arith.constant 5 : index
    %c5_91 = arith.constant 5 : index
    %208 = vector.load %arg4[%c5_90, %c5_91] : memref<22x22xf32, #tpu.memory_space<vmem>>, vector<16x16xf32>
    %209 = vector.broadcast %207 : f32 to vector<16x16xf32>
    %210 = arith.mulf %209, %208 : vector<16x16xf32>
    %211 = arith.addf %206, %210 : vector<16x16xf32>
    %c41 = arith.constant 41 : index
    %212 = memref.load %arg2[%c41] : memref<49xf32, #tpu.memory_space<smem>>
    %c5_92 = arith.constant 5 : index
    %c6_93 = arith.constant 6 : index
    %213 = vector.load %arg4[%c5_92, %c6_93] : memref<22x22xf32, #tpu.memory_space<vmem>>, vector<16x16xf32>
    %214 = vector.broadcast %212 : f32 to vector<16x16xf32>
    %215 = arith.mulf %214, %213 : vector<16x16xf32>
    %216 = arith.addf %211, %215 : vector<16x16xf32>
    %c42 = arith.constant 42 : index
    %217 = memref.load %arg2[%c42] : memref<49xf32, #tpu.memory_space<smem>>
    %c6_94 = arith.constant 6 : index
    %c0_95 = arith.constant 0 : index
    %218 = vector.load %arg4[%c6_94, %c0_95] : memref<22x22xf32, #tpu.memory_space<vmem>>, vector<16x16xf32>
    %219 = vector.broadcast %217 : f32 to vector<16x16xf32>
    %220 = arith.mulf %219, %218 : vector<16x16xf32>
    %221 = arith.addf %216, %220 : vector<16x16xf32>
    %c43 = arith.constant 43 : index
    %222 = memref.load %arg2[%c43] : memref<49xf32, #tpu.memory_space<smem>>
    %c6_96 = arith.constant 6 : index
    %c1_97 = arith.constant 1 : index
    %223 = vector.load %arg4[%c6_96, %c1_97] : memref<22x22xf32, #tpu.memory_space<vmem>>, vector<16x16xf32>
    %224 = vector.broadcast %222 : f32 to vector<16x16xf32>
    %225 = arith.mulf %224, %223 : vector<16x16xf32>
    %226 = arith.addf %221, %225 : vector<16x16xf32>
    %c44 = arith.constant 44 : index
    %227 = memref.load %arg2[%c44] : memref<49xf32, #tpu.memory_space<smem>>
    %c6_98 = arith.constant 6 : index
    %c2_99 = arith.constant 2 : index
    %228 = vector.load %arg4[%c6_98, %c2_99] : memref<22x22xf32, #tpu.memory_space<vmem>>, vector<16x16xf32>
    %229 = vector.broadcast %227 : f32 to vector<16x16xf32>
    %230 = arith.mulf %229, %228 : vector<16x16xf32>
    %231 = arith.addf %226, %230 : vector<16x16xf32>
    %c45 = arith.constant 45 : index
    %232 = memref.load %arg2[%c45] : memref<49xf32, #tpu.memory_space<smem>>
    %c6_100 = arith.constant 6 : index
    %c3_101 = arith.constant 3 : index
    %233 = vector.load %arg4[%c6_100, %c3_101] : memref<22x22xf32, #tpu.memory_space<vmem>>, vector<16x16xf32>
    %234 = vector.broadcast %232 : f32 to vector<16x16xf32>
    %235 = arith.mulf %234, %233 : vector<16x16xf32>
    %236 = arith.addf %231, %235 : vector<16x16xf32>
    %c46 = arith.constant 46 : index
    %237 = memref.load %arg2[%c46] : memref<49xf32, #tpu.memory_space<smem>>
    %c6_102 = arith.constant 6 : index
    %c4_103 = arith.constant 4 : index
    %238 = vector.load %arg4[%c6_102, %c4_103] : memref<22x22xf32, #tpu.memory_space<vmem>>, vector<16x16xf32>
    %239 = vector.broadcast %237 : f32 to vector<16x16xf32>
    %240 = arith.mulf %239, %238 : vector<16x16xf32>
    %241 = arith.addf %236, %240 : vector<16x16xf32>
    %c47 = arith.constant 47 : index
    %242 = memref.load %arg2[%c47] : memref<49xf32, #tpu.memory_space<smem>>
    %c6_104 = arith.constant 6 : index
    %c5_105 = arith.constant 5 : index
    %243 = vector.load %arg4[%c6_104, %c5_105] : memref<22x22xf32, #tpu.memory_space<vmem>>, vector<16x16xf32>
    %244 = vector.broadcast %242 : f32 to vector<16x16xf32>
    %245 = arith.mulf %244, %243 : vector<16x16xf32>
    %246 = arith.addf %241, %245 : vector<16x16xf32>
    %c48 = arith.constant 48 : index
    %247 = memref.load %arg2[%c48] : memref<49xf32, #tpu.memory_space<smem>>
    %c6_106 = arith.constant 6 : index
    %c6_107 = arith.constant 6 : index
    %248 = vector.load %arg4[%c6_106, %c6_107] : memref<22x22xf32, #tpu.memory_space<vmem>>, vector<16x16xf32>
    %249 = vector.broadcast %247 : f32 to vector<16x16xf32>
    %250 = arith.mulf %249, %248 : vector<16x16xf32>
    %251 = arith.addf %246, %250 : vector<16x16xf32>
    %252 = arith.negf %251 : vector<16x16xf32>
    %253 = math.exp %252 : vector<16x16xf32>
    %cst_108 = arith.constant 1.000000e+00 : f32
    %254 = vector.broadcast %cst_108 : f32 to vector<16x16xf32>
    %255 = arith.addf %254, %253 : vector<16x16xf32>
    %256 = arith.divf %254, %255 : vector<16x16xf32>
    %c0_109 = arith.constant 0 : index
    %c0_110 = arith.constant 0 : index
    %c0_111 = arith.constant 0 : index
    %c0_112 = arith.constant 0 : index
    %257 = vector.load %arg3[%c0_109, %c0_110, %c0_111, %c0_112] : memref<1x1x16x16xf32, #tpu.memory_space<vmem>>, vector<1x1x16x16xf32>
    %258 = vector.shape_cast %257 : vector<1x1x16x16xf32> to vector<16x16xf32>
    %259 = vector.shape_cast %256 : vector<16x16xf32> to vector<1x1x16x16xf32>
    tpu.vector_store %arg3[%c0_109, %c0_110, %c0_111, %c0_112], %259 {strides = array<i32>} : memref<1x1x16x16xf32, #tpu.memory_space<vmem>>, vector<1x1x16x16xf32>,
    return
  }
  func.func @transform_0(%arg0: i32) -> (i32, i32, i32, i32) {
    %c0_i32 = arith.constant 0 : i32
    %c0_i32_0 = arith.constant 0 : i32
    %c0_i32_1 = arith.constant 0 : i32
    %c0_i32_2 = arith.constant 0 : i32
    return %arg0, %c0_i32, %c0_i32_0, %c0_i32_1 : i32, i32, i32, i32
  }
  func.func @transform_1(%arg0: i32) -> i32 {
    %c0_i32 = arith.constant 0 : i32
    %c0_i32_0 = arith.constant 0 : i32
    return %c0_i32 : i32
  }
  func.func @transform_2(%arg0: i32) -> (i32, i32, i32, i32) {
    %c0_i32 = arith.constant 0 : i32
    %c0_i32_0 = arith.constant 0 : i32
    %c0_i32_1 = arith.constant 0 : i32
    %c0_i32_2 = arith.constant 0 : i32
    return %arg0, %c0_i32, %c0_i32_0, %c0_i32_1 : i32, i32, i32, i32
  }
}

</mosaic_0001>

<bundles_post_ra>
// kernel: sat_forward.1
= control target key start
LH: loop header
LB: loop body
LE: loop exit
PB: predicated region body
PF: predicated region fallthrough
CT: control target
= control target key end

     0   :  { %7 = vsyncpa [#allocation4], 0  ;;  %s1780_s0 = inlined_call_operand.hbm [shape: f32[2,8,16,16], index: 0, kind: input, shape index: {}]   ;;  %s1781_s1 = inlined_call_operand.vmem [shape: f32[49], index: 1, kind: input, shape index: {}]   ;;  %s1782_s2 = inlined_call_operand.hbm [shape: f32[2,1,16,16], index: 2, kind: output, shape index: {}]  }
   0x1   :  { %9 = vsyncpa [#allocation4 + $0x1], 0 }
   0x2   :  { %10 = vsyncpa [#allocation6], 0 }
   0x3   :  { %11 = vsyncpa [#allocation5], 0 }
   0x4   :  { %13 = vsyncpa [#allocation5 + $0x1], 0  ;;  %s1284_s9 = smov 0   ;;  %s1286_s10 = smov 0  }
   0x5   :  { %s1288_s11 = smov 0   ;;  %s1290_s12 = smov 0  }
   0x6 LB: > { %s1305_s13 = sadd.s32 4294967295, %s1252_s12   ;;  %s996_s14 = sadd.s32 4294967294, %s1252_s12   ;;  %s1252_s12 = sphi %s1290_s12, %s1804_s12   ;;  %s1248_s11 = sphi %s1288_s11, %s1803_s11   ;;  %s1244_s10 = sphi %s1286_s10, %s1802_s10   ;;  %s1240_s9 = sphi %s1284_s9, %s1801_s9  }
   0x7   : > { %s1309_s15 = sadd.s32 1, %s1252_s12   ;;  %s26_s16 = sadd.s32 1, %s1248_s11 }
   0x8   : > { %s23_s17 = ssub.s32 %s1252_s12, %s1309_s15  ;;  %p33_p0 = scmp.ne.s32.totalorder %s1248_s11, %s1244_s10 }
   0x9   : > { %p24_p1 = scmp.eq.s32.totalorder %s23_s17, 0  ;;  %p34_p2 = scmp.eq.s32.totalorder %s1252_s12, 0 }
   0xa   : > { %p39_p3 = scmp.ne.s32.totalorder %s1244_s10, %s1240_s9  ;;  %p1784_p4 = scmp.eq.s32.totalorder %s1305_s13, 0 }
   0xb   : > { %s1321_s18 = scalar_select %p24_p1, %s1248_s11, %s26_s16  }
   0xc   : > { %p1323_p5 = por %p34_p2, %p33_p0  ;;  %p1329_p6 = por %p1784_p4, %p39_p3 }
   0xd   : > { %p84_p7 = scmp.eq.s32.totalorder %s1305_s13, 1  ;;  %p90_p8 = scmp.eq.s32.totalorder %s996_s14, 1 }
   0xe   : > { %s1788_s20 = scalar_select %p1329_p6, 1, 0 }
   0xf   : > { %p997_p9 = scmp.ge.s32.totalorder %s1252_s12, 1  ;;  %p97_p10 = scmp.lt.s32.totalorder %s1252_s12, 3 }
  0x10   : > { %p1336_p11 = por %p84_p7, %p33_p0  ;;  %p1340_p12 = por %p90_p8, %p39_p3 }
  0x11   : > { %p1344_p13 = pnand %p997_p9, %p97_p10  ;;  %s110_s26 = sshll.u32 %s1781_s1, 4  ;;  %s111_s26 = int_to_ptr.vmem [resolvable:$true] %s110_s26 }
  0x12   : > { %s1789_s21 = scalar_select %p1336_p11, 1, 0 }
  0x13   : > { %s1790_s22 = scalar_select %p1340_p12, 1, 0 }
  0x14   : > { %s1791_s23 = scalar_select %p1344_p13, 1, 0 }
  0x15   : > { %p1072_p1 = pneg %p1344_p13  ;;  %p1085_p2 = scmp.lt.s32.totalorder %s1252_s12, 2 }
  0x16   : > { %s121_s28 = sand.u32 1, %s1248_s11   ;;  %s1141_s3 = scalar_lea.vmem %s111_s26, 16 }
  0x17   : > { %p1357_p7 = pnand %p1072_p1, %p1784_p4  ;;  %p1364_p3 = pnand %p1085_p2, %p1323_p5 }
  0x18   : > { %s1000_s30 = sshll.u32 %s121_s28, 7  ;;  %p1142_p8 = scmp.ne.s32.totalorder %s111_s26, %s1141_s3 }
  0x19   : > { %p1143_p9 = pneg %p1357_p7  ;;  %p1149_p12 = scmp.lt.s32.totalorder %s111_s26, %s111_s26 }
  0x1a   : > { %p1150_p11 = scmp.lt.s32.totalorder %s1141_s3, %s1141_s3 }
  0x1b   : > { %p1144_p10 = pnand %p1143_p9, %p1142_p8 }
  0x1c   : > { %p1151_p1 = por %p1150_p11, %p1149_p12 }
  0x1d   : > { %p1145_p0 = pneg %p1144_p10 }
  0x1f   : > { %p1152_p4 = pnand %p1151_p1, %p1145_p0 }
  0x21   : > { %1155 = shalt.err (!%p1152_p4)
}
  0x22   : > { %s1254_s4 = smov [#allocation7]   ;;  %s1062_s5 = sshll.u32 %s1252_s12, 11 }
  0x23   : > { %1075 = dma.vmem_to_smem (!%p1357_p7), %s111_s26, 16, %s1254_s4, [#allocation6]  }
  0x24   : > { %s125_s6 = scalar_lea.vmem [#allocation3], %s1000_s30  ;;  %s1376_s16 = scalar_lea.hbm %s1780_s0, %s1062_s5 }
  0x25   : > { %s132_s7 = sshll.u32 %s125_s6, 4  ;;  %s1380_s17 = scalar_lea.sflag [#allocation4], %s121_s28  ;;  %s1378_s7 = int_to_ptr.vmem [resolvable:$true] %s132_s7 }
  0x26   : > { %s1156_s19 = scalar_lea.hbm %s1376_s16, 2048  ;;  %p1158_p5 = pneg %p1364_p3 }
  0x27   : > { %p1157_p4 = scmp.ne.s32.totalorder %s1376_s16, %s1156_s19  ;;  %s1161_s26 = scalar_lea.hbm %s1780_s0, 4096 }
  0x28   : > { %p1162_p0 = scmp.lt.s32.totalorder %s1376_s16, %s1780_s0  ;;  %p1163_p2 = scmp.lt.s32.totalorder %s1161_s26, %s1156_s19 }
  0x29   : > { %p1159_p11 = pnand %p1158_p5, %p1157_p4 }
  0x2a   : > { %p1164_p7 = por %p1163_p2, %p1162_p0 }
  0x2b   : > { %p1160_p12 = pneg %p1159_p11 }
  0x2d   : > { %p1165_p8 = pnand %p1164_p7, %p1160_p12 }
  0x2f   : > { %1168 = shalt.err (!%p1165_p8)
}
  0x30   : > { %s1169_s28 = scalar_lea.vmem %s1378_s7, 2048  ;;  %s1255_s3 = smov [#allocation3]  }
  0x31   : > { %p1170_p9 = scmp.ne.s32.totalorder %s1378_s7, %s1169_s28  ;;  %s1174_s4 = sshll.u32 %s1255_s3, 4  ;;  %s1175_s4 = int_to_ptr.vmem [resolvable:$false] %s1174_s4 }
  0x32   : > { %s1176_s5 = scalar_lea.vmem %s1175_s4, 4096  ;;  %p1177_p4 = scmp.lt.s32.totalorder %s1378_s7, %s1175_s4 }
  0x33   : > { %p1172_p10 = pnand %p1170_p9, %p1158_p5  ;;  %p1178_p11 = scmp.lt.s32.totalorder %s1176_s5, %s1169_s28 }
  0x35   : > { %p1173_p1 = pneg %p1172_p10  ;;  %p1179_p6 = por %p1178_p11, %p1177_p4 }
  0x37   : > { %p1180_p13 = pnand %p1179_p6, %p1173_p1 }
  0x39   : > { %1183 = shalt.err (!%p1180_p13)
}
  0x3a   : > { %s1256_s6 = smov 128   ;;  %s1257_s8 = smov 8  }
  0x3b   : > { %1079 = dma.hbm_to_vmem [thread:$0]  (!%p1364_p3), %s1376_s16, 2048, %s1378_s7, %s1380_s17, %s1256_s6, %s1256_s6, %s1257_s8  }
  0x3c   : > { %p1794_p5 = scmp.ne.s32.totalorder %s1791_s23, 0 }
  0x3d   : > { %s1404_s14 = sand.u32 (!%p1794_p5), 1, %s1244_s10   ;;  %p1795_p6 = scmp.ne.s32.totalorder (!%p1794_p5), %s1788_s20, 0 }
  0x3e   : > { %144 = sbr.rel (%p1794_p5) target bundleno = 541 (0x21d), region = 28  ;;  %s1004_s19 = sshll.u32 (!%p1794_p5), %s1404_s14, 7 }
  0x3f   : > { %s147_s24 = scalar_lea.sflag (!%p1794_p5), [#allocation4], %s1404_s14  ;;  %s1408_s25 = scalar_lea.vmem (!%p1794_p5), [#allocation3], %s1004_s19 }
  0x43   : > { %1227 = dma.done.wait (%p1795_p6), %s147_s24, 2048  }
  0x44   : > { %1229 = vsyncadd (%p1795_p6), %s147_s24, 4294965248  ;;  %p1796_p13 = scmp.eq.s32.totalorder %s1305_s13, 0 }
  0x46   : > { %1231 = dma.done.wait (%p1796_p13), [#allocation6], 16   ;;  %p1797_p3 = pmov %p1796_p13 }
  0x48   : > { %1233 = vsyncadd (%p1797_p3), [#allocation6], 4294967280 }
  0x49   : > { %159 = sfence }
  0x4a   : > { %v176_v0 = vld [vmem:[%s1408_s25] sm:$0xff]  ;;  %v178_v1 = vld [vmem:[%s1408_s25 + $0x10] sm:$0xff]  ;;  %vm192_vm0 = vcmask 130048   ;;  %vm223_vm1 = vcmask 179200   ;;  %v177_v15 = vld [vmem:[%s1408_s25 + $0x8] sm:$0xff]  ;;  %v1258_v42 = vmov 0.0  }
  0x4b   : > { %v180_v2 = vld [vmem:[%s1408_s25 + $0x20] sm:$0xff]  ;;  %v182_v3 = vld [vmem:[%s1408_s25 + $0x30] sm:$0xff]  ;;  %v193_v6 = vsel %vm192_vm0, %v176_v0, -inf  ;;  %v194_v7 = vsel %vm192_vm0, %v178_v1, -inf  ;;  %v179_v19 = vld [vmem:[%s1408_s25 + $0x18] sm:$0xff]  ;;  %v208_v22 = vsel %vm192_vm0, %v177_v15, -inf }
  0x4c   : > { %v184_v4 = vld [vmem:[%s1408_s25 + $0x40] sm:$0xff]  ;;  %v186_v5 = vld [vmem:[%s1408_s25 + $0x50] sm:$0xff]  ;;  %v195_v8 = vsel %vm192_vm0, %v180_v2, -inf  ;;  %v197_v12 = vsel %vm192_vm0, %v182_v3, -inf  ;;  %v181_v20 = vld [vmem:[%s1408_s25 + $0x28] sm:$0xff]  ;;  %v209_v27 = vsel %vm192_vm0, %v179_v19, -inf }
  0x4d   : > { %v188_v9 = vld [vmem:[%s1408_s25 + $0x60] sm:$0xff]  ;;  %v190_v10 = vld [vmem:[%s1408_s25 + $0x70] sm:$0xff]  ;;  %v196_v11 = vmax.f32 %v193_v6, %v195_v8  ;;  %v199_v13 = vsel %vm192_vm0, %v184_v4, -inf  ;;  %v201_v14 = vsel %vm192_vm0, %v186_v5, -inf  ;;  %v198_v16 = vmax.f32 %v194_v7, %v197_v12  ;;  %v183_v21 = vld [vmem:[%s1408_s25 + $0x38] sm:$0xff]  ;;  %224 = vst.msk [vmem:[#allocation2] sm:$0xff] %vm223_vm1, %v1258_v42 }
  0x4e   : > { %v203_v17 = vsel %vm192_vm0, %v188_v9, -inf  ;;  %v205_v18 = vsel %vm192_vm0, %v190_v10, -inf  ;;  %v185_v24 = vld [vmem:[%s1408_s25 + $0x48] sm:$0xff]  ;;  %v187_v25 = vld [vmem:[%s1408_s25 + $0x58] sm:$0xff]  ;;  %v210_v28 = vsel %vm192_vm0, %v181_v20, -inf  ;;  %v212_v29 = vsel %vm192_vm0, %v183_v21, -inf }
  0x4f   : > { %v200_v23 = vmax.f32 %v196_v11, %v199_v13  ;;  %v189_v26 = vld [vmem:[%s1408_s25 + $0x68] sm:$0xff]  ;;  %v202_v30 = vmax.f32 %v198_v16, %v201_v14  ;;  %v191_v31 = vld [vmem:[%s1408_s25 + $0x78] sm:$0xff]  ;;  %v211_v32 = vmax.f32 %v208_v22, %v210_v28  ;;  %v213_v33 = vmax.f32 %v209_v27, %v212_v29  ;;  %225 = vst.msk [vmem:[#allocation2 + $0x8] sm:$0xff] %vm223_vm1, %v1258_v42  ;;  %s1259_s20 = smov 3   ;;  %s1008_s23 = sld [smem:[#allocation7 + $0x2]] }
  0x50   : > { %v214_v34 = vsel %vm192_vm0, %v185_v24, -inf  ;;  %v216_v36 = vsel %vm192_vm0, %v187_v25, -inf  ;;  %v218_v37 = vsel %vm192_vm0, %v189_v26, -inf  ;;  %v220_v38 = vsel %vm192_vm0, %v191_v31, -inf  ;;  %s1007_s29 = sld [smem:[#allocation7 + $0x1]]  ;;  %s1260_s26 = smov 126  }
  0x51   : > { %v204_v35 = vmax.f32 %v200_v23, %v203_v17  ;;  %v206_v39 = vmax.f32 %v202_v30, %v205_v18  ;;  %v215_v40 = vmax.f32 %v211_v32, %v214_v34  ;;  %v217_v41 = vmax.f32 %v213_v33, %v216_v36  ;;  %s1452_s7 = sld [smem:[#allocation7 + $0x3]]  ;;  %s1261_s27 = smov 127  }
  0x52   : > { %vm226_vm2 = vcmask 177152   ;;  %vm236_vm3 = vcmask 154648   ;;  %s1454_s16 = sld [smem:[#allocation7 + $0x4]]  ;;  %s1262_s28 = smov 125  }
  0x53   : > { %v207_v43 = vmax.f32 %v204_v35, %v206_v39  ;;  %v219_v44 = vmax.f32 %v215_v40, %v218_v37  ;;  %v221_v45 = vmax.f32 %v217_v41, %v220_v38  ;;  %227 = vst.msk [vmem:[#allocation2 + $0x10] sm:$0x3f] %vm226_vm2, %v1258_v42  ;;  %s1461_s17 = sld [smem:[#allocation7 + $0x5]]  ;;  %s1263_s4 = smov 124  }
  0x54   : > { %s1470_s30 = sld [smem:[#allocation7 + $0x6]]  ;;  %s1264_s6 = smov 123  }
  0x55   : > { %230 = vrot.lane.b32.xlu0 %v207_v43, %s1259_s20  ;;  %v222_v46 = vmax.f32 %v219_v44, %v221_v45  ;;  %v262_v49 = vstv %s1008_s23  ;;  %s1477_s3 = sld [smem:[#allocation7 + $0x8]]  ;;  %s1265_s19 = smov 122  }
  0x56   : > { %v248_v50 = vstv %s1007_s29  ;;  %s1484_s5 = sld [smem:[#allocation7 + $0x9]]  ;;  %p1798_p0 = scmp.ne.s32.totalorder %s1789_s21, 0 }
  0x57   : > { %v276_v54 = vstv %s1452_s7  ;;  %s1016_s8 = sld [smem:[#allocation7 + $0xa]] }
  0x58   : > { %v290_v58 = vstv %s1454_s16  ;;  %s1017_s24 = sld [smem:[#allocation7 + $0xb]] }
  0x59   : > { %232 = vrot.lane.b32.xlu0 %v222_v46, %s1259_s20  ;;  %v304_v61 = vstv %s1461_s17  ;;  %s1018_s25 = sld [smem:[#allocation7 + $0xc]] }
  0x5a   : > { %v318_v0 = vstv %s1470_s30  ;;  %s1019_s20 = sld [smem:[#allocation7 + $0xd]] }
  0x5b   : > { %v340_v4 = vstv %s1477_s3  ;;  %s1021_s23 = sld [smem:[#allocation7 + $0xf]] }
  0x5c   : > { %v354_v7 = vstv %s1484_s5  ;;  %s1022_s29 = sld [smem:[#allocation7 + $0x10]] }
  0x5d   : > { %v368_v10 = vstv %s1016_s8  ;;  %s1023_s7 = sld [smem:[#allocation7 + $0x11]] }
  0x5e   : > { %v382_v14 = vstv %s1017_s24  ;;  %s1024_s16 = sld [smem:[#allocation7 + $0x12]] }
  0x5f   : > { %v396_v17 = vstv %s1018_s25  ;;  %s1025_s17 = sld [smem:[#allocation7 + $0x13]] }
  0x60   : > { %v410_v20 = vstv %s1019_s20  ;;  %s1026_s30 = sld [smem:[#allocation7 + $0x14]] }
  0x61   : > { %v432_v24 = vstv %s1021_s23  ;;  %s1028_s3 = sld [smem:[#allocation7 + $0x16]] }
  0x62   : > { %v446_v27 = vstv %s1022_s29  ;;  %s1029_s5 = sld [smem:[#allocation7 + $0x17]] }
  0x63   : > { %v460_v30 = vstv %s1023_s7  ;;  %s1030_s8 = sld [smem:[#allocation7 + $0x18]] }
  0x64   : > { %v474_v34 = vstv %s1024_s16  ;;  %s1031_s24 = sld [smem:[#allocation7 + $0x19]] }
  0x65   : > { %v488_v37 = vstv %s1025_s17  ;;  %s1032_s25 = sld [smem:[#allocation7 + $0x1a]] }
  0x66   : > { %v502_v40 = vstv %s1026_s30  ;;  %s1033_s20 = sld [smem:[#allocation7 + $0x1b]] }
  0x67   : > { %v524_v44 = vstv %s1028_s3  ;;  %s1035_s23 = sld [smem:[#allocation7 + $0x1d]] }
  0x68   : > { %s1036_s29 = sld [smem:[#allocation7 + $0x1e]] }
  0x69   : > { %s1037_s7 = sld [smem:[#allocation7 + $0x1f]] }
  0x6a   : > { %s1038_s16 = sld [smem:[#allocation7 + $0x20]] }
  0x6b   : > { %s1588_s17 = sld [smem:[#allocation7 + $0x21]] }
  0x6c   : > { %s1594_s30 = sld [smem:[#allocation7 + $0x22]] }
  0x6d   : > { %s239_s3 = sld [smem:[#allocation7]] }
  0xc7   : > { %v231_v47 = vpop.permute.xlu0 %230 }
  0xc8   : > { %237 = vst.msk [vmem:[#allocation2 + $0x3] sm:$0xff] %vm236_vm3, %v231_v47  ;;  %v538_v47 = vstv %s1029_s5  ;;  %s1601_s5 = sld [smem:[#allocation7 + $0x24]] }
  0xcb   : > { %v233_v48 = vpop.permute.xlu0 %232 }
  0xcc   : > { %238 = vst.msk [vmem:[#allocation2 + $0xb] sm:$0xff] %vm236_vm3, %v233_v48 }
  0xcf   : > { %v1456_v51 = vld [vmem:[#allocation2] sm:$0xff] }
  0xd0   : > { %v263_v52 = vmul.f32 %v262_v49, %v1456_v51  ;;  %v249_v53 = vmul.f32 %v248_v50, %v1456_v51  ;;  %v277_v57 = vmul.f32 %v276_v54, %v1456_v51  ;;  %v291_v59 = vmul.f32 %v290_v58, %v1456_v51  ;;  %v1490_v3 = vld [vmem:[#allocation2 + $0x1] sm:$0xff] }
  0xd1   : > { %v305_v62 = vmul.f32 %v304_v61, %v1456_v51  ;;  %v319_v1 = vmul.f32 %v318_v0, %v1456_v51  ;;  %v341_v5 = vmul.f32 %v340_v4, %v1490_v3  ;;  %v355_v8 = vmul.f32 %v354_v7, %v1490_v3  ;;  %v1520_v23 = vld [vmem:[#allocation2 + $0x2] sm:$0xff] }
  0xd2   : > { %267 = vrot.lane.b32.xlu0 %v263_v52, %s1260_s26  ;;  %253 = vrot.lane.b32.xlu1 %v249_v53, %s1261_s27  ;;  %v369_v12 = vmul.f32 %v368_v10, %v1490_v3  ;;  %v383_v15 = vmul.f32 %v382_v14, %v1490_v3  ;;  %v397_v18 = vmul.f32 %v396_v17, %v1490_v3  ;;  %v1548_v43 = vld [vmem:[#allocation2 + $0x3] sm:$0xff] }
  0xd3   : > { %v1465_v55 = vld [vmem:[#allocation2 + $0x8] sm:$0xff]  ;;  %v411_v21 = vmul.f32 %v410_v20, %v1490_v3  ;;  %v433_v25 = vmul.f32 %v432_v24, %v1520_v23  ;;  %v447_v28 = vmul.f32 %v446_v27, %v1520_v23  ;;  %v461_v32 = vmul.f32 %v460_v30, %v1520_v23 }
  0xd4   : > { %v250_v56 = vmul.f32 %v248_v50, %v1465_v55  ;;  %v264_v60 = vmul.f32 %v262_v49, %v1465_v55  ;;  %v278_v63 = vmul.f32 %v276_v54, %v1465_v55  ;;  %v292_v2 = vmul.f32 %v290_v58, %v1465_v55  ;;  %v1502_v11 = vld [vmem:[#allocation2 + $0x9] sm:$0xff] }
  0xd5   : > { %v306_v6 = vmul.f32 %v304_v61, %v1465_v55  ;;  %v320_v9 = vmul.f32 %v318_v0, %v1465_v55  ;;  %v342_v13 = vmul.f32 %v340_v4, %v1502_v11  ;;  %v356_v16 = vmul.f32 %v354_v7, %v1502_v11  ;;  %v1530_v31 = vld [vmem:[#allocation2 + $0xa] sm:$0xff] }
  0xd6   : > { %281 = vrot.lane.b32.xlu0 %v277_v57, %s1262_s28  ;;  %255 = vrot.lane.b32.xlu1 %v250_v56, %s1261_s27  ;;  %v370_v19 = vmul.f32 %v368_v10, %v1502_v11  ;;  %v384_v22 = vmul.f32 %v382_v14, %v1502_v11  ;;  %v398_v26 = vmul.f32 %v396_v17, %v1502_v11  ;;  %v552_v50 = vstv %s1030_s8  ;;  %v1558_v52 = vld [vmem:[#allocation2 + $0xb] sm:$0xff]  ;;  %s1608_s8 = sld [smem:[#allocation7 + $0x25]] }
  0xd7   : > { %v412_v29 = vmul.f32 %v410_v20, %v1502_v11  ;;  %v434_v33 = vmul.f32 %v432_v24, %v1530_v31  ;;  %v475_v35 = vmul.f32 %v474_v34, %v1520_v23  ;;  %v448_v36 = vmul.f32 %v446_v27, %v1530_v31  ;;  %v1586_v10 = vld [vmem:[#allocation2 + $0xc] sm:$0xff] }
  0xd8   : > { %v489_v38 = vmul.f32 %v488_v37, %v1520_v23  ;;  %v462_v39 = vmul.f32 %v460_v30, %v1530_v31  ;;  %v503_v41 = vmul.f32 %v502_v40, %v1520_v23  ;;  %v476_v42 = vmul.f32 %v474_v34, %v1530_v31 }
  0xd9   : > { %v525_v45 = vmul.f32 %v524_v44, %v1548_v43  ;;  %v490_v46 = vmul.f32 %v488_v37, %v1530_v31  ;;  %v539_v48 = vmul.f32 %v538_v47, %v1548_v43  ;;  %v504_v49 = vmul.f32 %v502_v40, %v1530_v31 }
  0xda   : > { %295 = vrot.lane.b32.xlu0 %v291_v59, %s1263_s4  ;;  %269 = vrot.lane.b32.xlu1 %v264_v60, %s1260_s26  ;;  %v553_v53 = vmul.f32 %v552_v50, %v1548_v43  ;;  %v526_v54 = vmul.f32 %v524_v44, %v1558_v52  ;;  %v566_v56 = vstv %s1031_s24  ;;  %v540_v58 = vmul.f32 %v538_v47, %v1558_v52  ;;  %s1617_s24 = sld [smem:[#allocation7 + $0x26]]  ;;  %v1633_v44 = vld [vmem:[#allocation2 + $0xd] sm:$0xff] }
  0xdb   : > { %v567_v57 = vmul.f32 %v566_v56, %v1548_v43  ;;  %v580_v59 = vstv %s1032_s25  ;;  %v554_v61 = vmul.f32 %v552_v50, %v1558_v52  ;;  %v568_v0 = vmul.f32 %v566_v56, %v1558_v52  ;;  %s1625_s25 = sld [smem:[#allocation7 + $0x27]] }
  0xdc   : > { %v581_v60 = vmul.f32 %v580_v59, %v1548_v43  ;;  %v658_v14 = vstv %s1038_s16  ;;  %v672_v17 = vstv %s1588_s17  ;;  %v686_v20 = vstv %s1594_s30  ;;  %s1660_s16 = sld [smem:[#allocation7 + $0x2c]] }
  0xdd   : > { %v242_v24 = vstv %s239_s3  ;;  %v722_v34 = vstv %s1608_s8  ;;  %s1669_s17 = sld [smem:[#allocation7 + $0x2d]] }
  0xde   : > { %309 = vrot.lane.b32.xlu0 %v305_v62, %s1264_s6  ;;  %283 = vrot.lane.b32.xlu1 %v278_v63, %s1262_s28  ;;  %v594_v62 = vstv %s1033_s20  ;;  %v243_v27 = vmul.f32 %v242_v24, %v1456_v51  ;;  %s1635_s20 = sld [smem:[#allocation7 + $0x28]] }
  0xdf   : > { %v595_v63 = vmul.f32 %v594_v62, %v1548_v43  ;;  %s1677_s30 = sld [smem:[#allocation7 + $0x2e]] }
  0xe0   : > { %s1686_s3 = sld [smem:[#allocation7 + $0x2f]] }
  0xe1   : > { %v750_v50 = vstv %s1625_s25  ;;  %s1695_s8 = sld [smem:[#allocation7 + $0x30]] }
  0xe2   : > { %323 = vrot.lane.b32.xlu0 %v319_v1, %s1265_s19  ;;  %297 = vrot.lane.b32.xlu1 %v292_v2, %s1263_s4  ;;  %v1576_v1 = vld [vmem:[#allocation2 + $0x4] sm:$0xff]  ;;  %v616_v2 = vstv %s1035_s23  ;;  %s1639_s23 = sld [smem:[#allocation7 + $0x7]] }
  0xe3   : > { %v617_v4 = vmul.f32 %v616_v2, %v1576_v1 }
  0xe6   : > { %345 = vrot.lane.b32.xlu0 %v341_v5, %s1261_s27  ;;  %311 = vrot.lane.b32.xlu1 %v306_v6, %s1264_s6  ;;  %v582_v5 = vmul.f32 %v580_v59, %v1558_v52  ;;  %v630_v6 = vstv %s1036_s29  ;;  %s1644_s29 = sld [smem:[#allocation7 + $0x29]]  ;;  %v764_v59 = vstv %s1635_s20 }
  0xe7   : > { %v631_v7 = vmul.f32 %v630_v6, %v1576_v1 }
  0xea   : > { %359 = vrot.lane.b32.xlu0 %v355_v8, %s1260_s26  ;;  %325 = vrot.lane.b32.xlu1 %v320_v9, %s1265_s19  ;;  %v596_v8 = vmul.f32 %v594_v62, %v1558_v52  ;;  %v644_v9 = vstv %s1037_s7  ;;  %s1651_s7 = sld [smem:[#allocation7 + $0x2b]] }
  0xee   : > { %373 = vrot.lane.b32.xlu0 %v369_v12, %s1262_s28  ;;  %347 = vrot.lane.b32.xlu1 %v342_v13, %s1261_s27  ;;  %v645_v12 = vmul.f32 %v644_v9, %v1576_v1  ;;  %v618_v13 = vmul.f32 %v616_v2, %v1586_v10 }
  0xf2   : > { %387 = vrot.lane.b32.xlu0 %v383_v15, %s1263_s4  ;;  %361 = vrot.lane.b32.xlu1 %v356_v16, %s1260_s26  ;;  %v659_v15 = vmul.f32 %v658_v14, %v1576_v1  ;;  %v632_v16 = vmul.f32 %v630_v6, %v1586_v10 }
  0xf6   : > { %401 = vrot.lane.b32.xlu0 %v397_v18, %s1264_s6  ;;  %375 = vrot.lane.b32.xlu1 %v370_v19, %s1262_s28  ;;  %v673_v18 = vmul.f32 %v672_v17, %v1576_v1  ;;  %v646_v19 = vmul.f32 %v644_v9, %v1586_v10 }
  0xfa   : > { %415 = vrot.lane.b32.xlu0 %v411_v21, %s1265_s19  ;;  %389 = vrot.lane.b32.xlu1 %v384_v22, %s1263_s4  ;;  %v687_v21 = vmul.f32 %v686_v20, %v1576_v1  ;;  %v660_v22 = vmul.f32 %v658_v14, %v1586_v10  ;;  %v752_v14 = vmul.f32 %v750_v50, %v1633_v44 }
  0xfe   : > { %437 = vrot.lane.b32.xlu0 %v433_v25, %s1261_s27  ;;  %403 = vrot.lane.b32.xlu1 %v398_v26, %s1264_s6  ;;  %v1614_v25 = vld [vmem:[#allocation2 + $0x5] sm:$0xff]  ;;  %v708_v26 = vstv %s1601_s5  ;;  %s1690_s5 = sld [smem:[#allocation7 + $0xe]] }
  0xff   : > { %v709_v30 = vmul.f32 %v708_v26, %v1614_v25  ;;  %v710_v47 = vmul.f32 %v708_v26, %v1633_v44  ;;  %v751_v56 = vmul.f32 %v750_v50, %v1614_v25 }
 0x102   : > { %451 = vrot.lane.b32.xlu0 %v447_v28, %s1260_s26  ;;  %417 = vrot.lane.b32.xlu1 %v412_v29, %s1265_s19 }
 0x106   : > { %465 = vrot.lane.b32.xlu0 %v461_v32, %s1262_s28  ;;  %439 = vrot.lane.b32.xlu1 %v434_v33, %s1261_s27  ;;  %v674_v32 = vmul.f32 %v672_v17, %v1586_v10 }
 0x10a   : > { %479 = vrot.lane.b32.xlu0 %v475_v35, %s1263_s4  ;;  %453 = vrot.lane.b32.xlu1 %v448_v36, %s1260_s26  ;;  %v244_v36 = vmul.f32 %v242_v24, %v1465_v55  ;;  %v814_v24 = vstv %s1660_s16 }
 0x10e   : > { %493 = vrot.lane.b32.xlu0 %v489_v38, %s1264_s6  ;;  %467 = vrot.lane.b32.xlu1 %v462_v39, %s1262_s28  ;;  %v723_v38 = vmul.f32 %v722_v34, %v1614_v25  ;;  %v688_v39 = vmul.f32 %v686_v20, %v1586_v10  ;;  %v766_v20 = vmul.f32 %v764_v59, %v1633_v44 }
 0x112   : > { %507 = vrot.lane.b32.xlu0 %v503_v41, %s1265_s19  ;;  %481 = vrot.lane.b32.xlu1 %v476_v42, %s1263_s4  ;;  %v736_v42 = vstv %s1617_s24  ;;  %s1063_s24 = sshll.u32 %s1305_s13, 8  ;;  %s1266_s13 = smov [#allocation8]  }
 0x113   : > { %v738_v2 = vmul.f32 %v736_v42, %v1633_v44 }
 0x116   : > { %529 = vrot.lane.b32.xlu0 %v525_v45, %s1261_s27  ;;  %495 = vrot.lane.b32.xlu1 %v490_v46, %s1264_s6  ;;  %v737_v46 = vmul.f32 %v736_v42, %v1614_v25 }
 0x11a   : > { %543 = vrot.lane.b32.xlu0 %v539_v48, %s1260_s26  ;;  %509 = vrot.lane.b32.xlu1 %v504_v49, %s1265_s19 }
 0x11e   : > { %557 = vrot.lane.b32.xlu0 %v553_v53, %s1262_s28  ;;  %531 = vrot.lane.b32.xlu1 %v526_v54, %s1261_s27 }
 0x122   : > { %571 = vrot.lane.b32.xlu0 %v567_v57, %s1263_s4  ;;  %545 = vrot.lane.b32.xlu1 %v540_v58, %s1260_s26  ;;  %v724_v57 = vmul.f32 %v722_v34, %v1633_v44 }
 0x126   : > { %585 = vrot.lane.b32.xlu0 %v581_v60, %s1264_s6  ;;  %559 = vrot.lane.b32.xlu1 %v554_v61, %s1262_s28  ;;  %v334_v60 = vstv %s1639_s23 }
 0x12a   : > { %599 = vrot.lane.b32.xlu0 %v595_v63, %s1265_s19  ;;  %573 = vrot.lane.b32.xlu1 %v568_v0, %s1263_s4  ;;  %v765_v0 = vmul.f32 %v764_v59, %v1614_v25 }
 0x12e   : > { %621 = vrot.lane.b32.xlu0 %v617_v4, %s1261_s27  ;;  %587 = vrot.lane.b32.xlu1 %v582_v5, %s1264_s6  ;;  %v335_v5 = vmul.f32 %v334_v60, %v1490_v3 }
 0x132   : > { %635 = vrot.lane.b32.xlu0 %v631_v7, %s1260_s26  ;;  %601 = vrot.lane.b32.xlu1 %v596_v8, %s1265_s19  ;;  %v778_v7 = vstv %s1644_s29  ;;  %s1734_s29 = scalar_lea.hbm %s1782_s2, %s1063_s24 }
 0x136   : > { %649 = vrot.lane.b32.xlu0 %v645_v12, %s1262_s28  ;;  %623 = vrot.lane.b32.xlu1 %v618_v13, %s1261_s27  ;;  %v779_v13 = vmul.f32 %v778_v7, %v1614_v25 }
 0x13a   : > { %663 = vrot.lane.b32.xlu0 %v659_v15, %s1263_s4  ;;  %637 = vrot.lane.b32.xlu1 %v632_v16, %s1260_s26  ;;  %v1666_v15 = vld [vmem:[#allocation2 + $0x6] sm:$0xff]  ;;  %v800_v16 = vstv %s1651_s7  ;;  %s898_s7 = scalar_lea.sflag [#allocation5], %s1404_s14 }
 0x13e   : > { %677 = vrot.lane.b32.xlu0 %v673_v18, %s1264_s6  ;;  %651 = vrot.lane.b32.xlu1 %v646_v19, %s1262_s28  ;;  %v801_v19 = vmul.f32 %v800_v16, %v1666_v15 }
 0x142   : > { %691 = vrot.lane.b32.xlu0 %v687_v21, %s1265_s19  ;;  %665 = vrot.lane.b32.xlu1 %v660_v22, %s1263_s4  ;;  %v336_v21 = vmul.f32 %v334_v60, %v1502_v11  ;;  %v870_v60 = vstv %s1695_s8 }
 0x144   : > { %v254_v28 = vpop.permute.xlu1 %253  ;;  %v268_v29 = vpop.permute.xlu0 %267 }
 0x145   : > { %v259_v33 = vadd.f32 %v254_v28, %v243_v27 }
 0x146   : > { %713 = vrot.lane.b32.xlu0 %v709_v30, %s1261_s27  ;;  %679 = vrot.lane.b32.xlu1 %v674_v32, %s1264_s6  ;;  %v780_v30 = vmul.f32 %v778_v7, %v1633_v44  ;;  %v828_v32 = vstv %s1669_s17  ;;  %s1188_s17 = sshll.u32 %s1266_s13, 4  ;;  %s1189_s17 = int_to_ptr.vmem [resolvable:$false] %s1188_s17 }
 0x147   : > { %v273_v35 = vadd.f32 %v268_v29, %v259_v33  ;;  %v815_v29 = vmul.f32 %v814_v24, %v1666_v15  ;;  %v1684_v33 = vld [vmem:[#allocation2 + $0xe] sm:$0xff] }
 0x148   : > { %v256_v37 = vpop.permute.xlu1 %255  ;;  %v282_v51 = vpop.permute.xlu0 %281 }
 0x149   : > { %v260_v40 = vadd.f32 %v256_v37, %v244_v36  ;;  %v287_v41 = vadd.f32 %v282_v51, %v273_v35  ;;  %v829_v36 = vmul.f32 %v828_v32, %v1666_v15  ;;  %v802_v37 = vmul.f32 %v800_v16, %v1684_v33 }
 0x14a   : > { %727 = vrot.lane.b32.xlu0 %v723_v38, %s1260_s26  ;;  %693 = vrot.lane.b32.xlu1 %v688_v39, %s1265_s19  ;;  %v842_v38 = vstv %s1677_s30  ;;  %s1190_s30 = scalar_lea.vmem %s1189_s17, 512 }
 0x14b   : > { %v843_v42 = vmul.f32 %v842_v38, %v1666_v15 }
 0x14c   : > { %v270_v55 = vpop.permute.xlu1 %269  ;;  %v296_v45 = vpop.permute.xlu0 %295 }
 0x14d   : > { %v274_v48 = vadd.f32 %v270_v55, %v260_v40  ;;  %v301_v49 = vadd.f32 %v296_v45, %v287_v41  ;;  %v816_v55 = vmul.f32 %v814_v24, %v1684_v33 }
 0x14e   : > { %741 = vrot.lane.b32.xlu0 %v737_v46, %s1262_s28  ;;  %715 = vrot.lane.b32.xlu1 %v710_v47, %s1261_s27  ;;  %v856_v46 = vstv %s1686_s3  ;;  %v426_v47 = vstv %s1690_s5 }
 0x150   : > { %v284_v53 = vpop.permute.xlu1 %283  ;;  %v310_v54 = vpop.permute.xlu0 %309 }
 0x151   : > { %v288_v58 = vadd.f32 %v284_v53, %v274_v48  ;;  %v315_v61 = vadd.f32 %v310_v54, %v301_v49  ;;  %v857_v54 = vmul.f32 %v856_v46, %v1666_v15 }
 0x152   : > { %755 = vrot.lane.b32.xlu0 %v751_v56, %s1263_s4  ;;  %729 = vrot.lane.b32.xlu1 %v724_v57, %s1260_s26  ;;  %v830_v56 = vmul.f32 %v828_v32, %v1684_v33 }
 0x154   : > { %v298_v62 = vpop.permute.xlu1 %297  ;;  %v324_v63 = vpop.permute.xlu0 %323 }
 0x155   : > { %v302_v4 = vadd.f32 %v298_v62, %v288_v58  ;;  %v329_v6 = vadd.f32 %v324_v63, %v315_v61  ;;  %v427_v58 = vmul.f32 %v426_v47, %v1520_v23 }
 0x156   : > { %769 = vrot.lane.b32.xlu0 %v765_v0, %s1264_s6  ;;  %743 = vrot.lane.b32.xlu1 %v738_v2, %s1262_s28  ;;  %v871_v2 = vmul.f32 %v870_v60, %v1666_v15 }
 0x157   : > { %v337_v8 = vadd.f32 %v335_v5, %v329_v6 }
 0x158   : > { %v312_v9 = vpop.permute.xlu1 %311  ;;  %v346_v12 = vpop.permute.xlu0 %345 }
 0x159   : > { %v316_v3 = vadd.f32 %v312_v9, %v302_v4  ;;  %v351_v11 = vadd.f32 %v346_v12, %v337_v8  ;;  %v844_v4 = vmul.f32 %v842_v38, %v1684_v33  ;;  %v858_v8 = vmul.f32 %v856_v46, %v1684_v33 }
 0x15a   : > { %783 = vrot.lane.b32.xlu0 %v779_v13, %s1265_s19  ;;  %757 = vrot.lane.b32.xlu1 %v752_v14, %s1263_s4  ;;  %v428_v9 = vmul.f32 %v426_v47, %v1530_v31 }
 0x15c   : > { %v326_v17 = vpop.permute.xlu1 %325  ;;  %v360_v18 = vpop.permute.xlu0 %359 }
 0x15d   : > { %v330_v22 = vadd.f32 %v326_v17, %v316_v3  ;;  %v365_v51 = vadd.f32 %v360_v18, %v351_v11  ;;  %v872_v3 = vmul.f32 %v870_v60, %v1684_v33 }
 0x15e   : > { %805 = vrot.lane.b32.xlu0 %v801_v19, %s1261_s27  ;;  %771 = vrot.lane.b32.xlu1 %v766_v20, %s1264_s6 }
 0x15f   : > { %v338_v26 = vadd.f32 %v336_v21, %v330_v22 }
 0x160   : > { %v348_v27 = vpop.permute.xlu1 %347  ;;  %v374_v28 = vpop.permute.xlu0 %373 }
 0x161   : > { %v379_v39 = vadd.f32 %v374_v28, %v365_v51  ;;  %v352_v48 = vadd.f32 %v348_v27, %v338_v26 }
 0x162   : > { %819 = vrot.lane.b32.xlu0 %v815_v29, %s1260_s26  ;;  %785 = vrot.lane.b32.xlu1 %v780_v30, %s1265_s19 }
 0x164   : > { %v362_v34 = vpop.permute.xlu1 %361  ;;  %v388_v35 = vpop.permute.xlu0 %387 }
 0x165   : > { %v393_v45 = vadd.f32 %v388_v35, %v379_v39  ;;  %v366_v57 = vadd.f32 %v362_v34, %v352_v48 }
 0x166   : > { %833 = vrot.lane.b32.xlu0 %v829_v36, %s1262_s28  ;;  %807 = vrot.lane.b32.xlu1 %v802_v37, %s1261_s27  ;;  %s1034_s27 = sld [smem:[#allocation7 + $0x1c]] }
 0x168   : > { %v376_v40 = vpop.permute.xlu1 %375  ;;  %v402_v41 = vpop.permute.xlu0 %401 }
 0x169   : > { %v407_v49 = vadd.f32 %v402_v41, %v393_v45  ;;  %v380_v61 = vadd.f32 %v376_v40, %v366_v57 }
 0x16a   : > { %847 = vrot.lane.b32.xlu0 %v843_v42, %s1263_s4  ;;  %821 = vrot.lane.b32.xlu1 %v816_v55, %s1260_s26  ;;  %s1027_s26 = sld [smem:[#allocation7 + $0x15]] }
 0x16c   : > { %v390_v50 = vpop.permute.xlu1 %389  ;;  %v416_v53 = vpop.permute.xlu0 %415 }
 0x16d   : > { %v421_v59 = vadd.f32 %v416_v53, %v407_v49  ;;  %v394_v5 = vadd.f32 %v390_v50, %v380_v61 }
 0x16e   : > { %861 = vrot.lane.b32.xlu0 %v857_v54, %s1264_s6  ;;  %835 = vrot.lane.b32.xlu1 %v830_v56, %s1262_s28  ;;  %s1041_s28 = sld [smem:[#allocation7 + $0x23]] }
 0x16f   : > { %v429_v62 = vadd.f32 %v427_v58, %v421_v59  ;;  %v610_v58 = vstv %s1034_s27 }
 0x170   : > { %v404_v63 = vpop.permute.xlu1 %403  ;;  %v438_v0 = vpop.permute.xlu0 %437  ;;  %v518_v31 = vstv %s1027_s26 }
 0x171   : > { %v408_v23 = vadd.f32 %v404_v63, %v394_v5  ;;  %v443_v17 = vadd.f32 %v438_v0, %v429_v62  ;;  %v519_v34 = vmul.f32 %v518_v31, %v1548_v43  ;;  %v520_v55 = vmul.f32 %v518_v31, %v1558_v52 }
 0x172   : > { %875 = vrot.lane.b32.xlu0 %v871_v2, %s1265_s19  ;;  %849 = vrot.lane.b32.xlu1 %v844_v4, %s1263_s4  ;;  %v611_v52 = vmul.f32 %v610_v58, %v1576_v1  ;;  %s1048_s4 = sld [smem:[#allocation7 + $0x2a]] }
 0x174   : > { %v418_v6 = vpop.permute.xlu1 %417  ;;  %v452_v7 = vpop.permute.xlu0 %451 }
 0x175   : > { %v422_v12 = vadd.f32 %v418_v6, %v408_v23  ;;  %v457_v20 = vadd.f32 %v452_v7, %v443_v17 }
 0x176   : > { %863 = vrot.lane.b32.xlu1 %v858_v8, %s1264_s6  ;;  %s1006_s6 = sshll.u32 %s1404_s14, 4 }
 0x177   : > { %v430_v13 = vadd.f32 %v428_v9, %v422_v12 }
 0x178   : > { %v440_v14 = vpop.permute.xlu1 %439  ;;  %v466_v16 = vpop.permute.xlu0 %465 }
 0x179   : > { %v471_v21 = vadd.f32 %v466_v16, %v457_v20  ;;  %v444_v27 = vadd.f32 %v440_v14, %v430_v13  ;;  %v612_v13 = vmul.f32 %v610_v58, %v1586_v10 }
 0x17a   : > { %877 = vrot.lane.b32.xlu1 %v872_v3, %s1265_s19  ;;  %s175_s19 = scalar_lea.vmem [#allocation8], %s1006_s6 }
 0x17b   : > { %s911_s25 = sshll.u32 %s175_s19, 4  ;;  %s1736_s25 = int_to_ptr.vmem [resolvable:$true] %s911_s25 }
 0x17c   : > { %v454_v18 = vpop.permute.xlu1 %453  ;;  %v480_v19 = vpop.permute.xlu0 %479  ;;  %s1184_s16 = scalar_lea.vmem %s1736_s25, 256  ;;  %p1191_p8 = scmp.lt.s32.totalorder %s1736_s25, %s1189_s17 }
 0x17d   : > { %v485_v26 = vadd.f32 %v480_v19, %v471_v21  ;;  %v458_v32 = vadd.f32 %v454_v18, %v444_v27  ;;  %p1185_p12 = scmp.ne.s32.totalorder %s1736_s25, %s1184_s16  ;;  %p1192_p9 = scmp.lt.s32.totalorder %s1190_s30, %s1184_s16 }
 0x17f   : > { %p1186_p2 = pnand %p1185_p12, %p1798_p0  ;;  %p1193_p10 = por %p1192_p9, %p1191_p8 }
 0x180   : > { %v468_v22 = vpop.permute.xlu1 %467  ;;  %v494_v24 = vpop.permute.xlu0 %493 }
 0x181   : > { %v499_v28 = vadd.f32 %v494_v24, %v485_v26  ;;  %v472_v35 = vadd.f32 %v468_v22, %v458_v32  ;;  %v702_v26 = vstv %s1041_s28  ;;  %p1187_p7 = pneg %p1186_p2 }
 0x182   : > { %v703_v10 = vmul.f32 %v702_v26, %v1614_v25 }
 0x183   : > { %p1194_p1 = pnand %p1193_p10, %p1187_p7 }
 0x184   : > { %v482_v29 = vpop.permute.xlu1 %481  ;;  %v508_v30 = vpop.permute.xlu0 %507 }
 0x185   : > { %v513_v11 = vadd.f32 %v508_v30, %v499_v28  ;;  %v486_v38 = vadd.f32 %v482_v29, %v472_v35 }
 0x187   : > { %v521_v36 = vadd.f32 %v519_v34, %v513_v11 }
 0x188   : > { %v496_v37 = vpop.permute.xlu1 %495  ;;  %v530_v51 = vpop.permute.xlu0 %529 }
 0x189   : > { %v500_v39 = vadd.f32 %v496_v37, %v486_v38  ;;  %v535_v48 = vadd.f32 %v530_v51, %v521_v36 }
 0x18c   : > { %v510_v40 = vpop.permute.xlu1 %509  ;;  %v544_v41 = vpop.permute.xlu0 %543 }
 0x18d   : > { %v514_v42 = vadd.f32 %v510_v40, %v500_v39  ;;  %v549_v53 = vadd.f32 %v544_v41, %v535_v48  ;;  %v704_v41 = vmul.f32 %v702_v26, %v1633_v44 }
 0x18f   : > { %v522_v45 = vadd.f32 %v520_v55, %v514_v42 }
 0x190   : > { %v532_v46 = vpop.permute.xlu1 %531  ;;  %v558_v47 = vpop.permute.xlu0 %557 }
 0x191   : > { %v563_v43 = vadd.f32 %v558_v47, %v549_v53  ;;  %v536_v59 = vadd.f32 %v532_v46, %v522_v45 }
 0x194   : > { %v546_v49 = vpop.permute.xlu1 %545  ;;  %v572_v50 = vpop.permute.xlu0 %571 }
 0x195   : > { %v577_v57 = vadd.f32 %v572_v50, %v563_v43  ;;  %v550_v63 = vadd.f32 %v546_v49, %v536_v59 }
 0x198   : > { %v560_v54 = vpop.permute.xlu1 %559  ;;  %v586_v56 = vpop.permute.xlu0 %585 }
 0x199   : > { %v591_v60 = vadd.f32 %v586_v56, %v577_v57  ;;  %v564_v2 = vadd.f32 %v560_v54, %v550_v63  ;;  %v794_v54 = vstv %s1048_s4 }
 0x19a   : > { %v795_v44 = vmul.f32 %v794_v54, %v1666_v15 }
 0x19c   : > { %v574_v61 = vpop.permute.xlu1 %573  ;;  %v600_v62 = vpop.permute.xlu0 %599 }
 0x19d   : > { %v605_v0 = vadd.f32 %v600_v62, %v591_v60  ;;  %v578_v6 = vadd.f32 %v574_v61, %v564_v2 }
 0x19f   : > { %v613_v4 = vadd.f32 %v611_v52, %v605_v0 }
 0x1a0   : > { %v588_v5 = vpop.permute.xlu1 %587  ;;  %v622_v23 = vpop.permute.xlu0 %621 }
 0x1a1   : > { %v592_v7 = vadd.f32 %v588_v5, %v578_v6  ;;  %v627_v17 = vadd.f32 %v622_v23, %v613_v4 }
 0x1a4   : > { %v602_v8 = vpop.permute.xlu1 %601  ;;  %v636_v9 = vpop.permute.xlu0 %635 }
 0x1a5   : > { %v606_v12 = vadd.f32 %v602_v8, %v592_v7  ;;  %v641_v20 = vadd.f32 %v636_v9, %v627_v17  ;;  %v796_v7 = vmul.f32 %v794_v54, %v1684_v33 }
 0x1a7   : > { %v614_v14 = vadd.f32 %v612_v13, %v606_v12 }
 0x1a8   : > { %v624_v16 = vpop.permute.xlu1 %623  ;;  %v650_v3 = vpop.permute.xlu0 %649 }
 0x1a9   : > { %v655_v1 = vadd.f32 %v650_v3, %v641_v20  ;;  %v628_v31 = vadd.f32 %v624_v16, %v614_v14 }
 0x1ac   : > { %v638_v18 = vpop.permute.xlu1 %637  ;;  %v664_v19 = vpop.permute.xlu0 %663 }
 0x1ad   : > { %v669_v24 = vadd.f32 %v664_v19, %v655_v1  ;;  %v642_v30 = vadd.f32 %v638_v18, %v628_v31 }
 0x1b0   : > { %v652_v21 = vpop.permute.xlu1 %651  ;;  %v678_v22 = vpop.permute.xlu0 %677 }
 0x1b1   : > { %v683_v27 = vadd.f32 %v678_v22, %v669_v24  ;;  %v656_v11 = vadd.f32 %v652_v21, %v642_v30 }
 0x1b4   : > { %v666_v28 = vpop.permute.xlu1 %665  ;;  %v692_v29 = vpop.permute.xlu0 %691 }
 0x1b5   : > { %v697_v32 = vadd.f32 %v692_v29, %v683_v27  ;;  %v670_v37 = vadd.f32 %v666_v28, %v656_v11 }
 0x1b7   : > { %v705_v34 = vadd.f32 %v703_v10, %v697_v32 }
 0x1b8   : > { %v680_v35 = vpop.permute.xlu1 %679  ;;  %v714_v36 = vpop.permute.xlu0 %713 }
 0x1b9   : > { %v684_v51 = vadd.f32 %v680_v35, %v670_v37  ;;  %v719_v46 = vadd.f32 %v714_v36, %v705_v34 }
 0x1bc   : > { %v694_v38 = vpop.permute.xlu1 %693  ;;  %v728_v39 = vpop.permute.xlu0 %727 }
 0x1bd   : > { %v698_v40 = vadd.f32 %v694_v38, %v684_v51  ;;  %v733_v49 = vadd.f32 %v728_v39, %v719_v46 }
 0x1bf   : > { %v706_v42 = vadd.f32 %v704_v41, %v698_v40 }
 0x1c0   : > { %v716_v55 = vpop.permute.xlu1 %715  ;;  %v742_v45 = vpop.permute.xlu0 %741 }
 0x1c1   : > { %v747_v25 = vadd.f32 %v742_v45, %v733_v49  ;;  %v720_v56 = vadd.f32 %v716_v55, %v706_v42 }
 0x1c4   : > { %v730_v47 = vpop.permute.xlu1 %729  ;;  %v756_v48 = vpop.permute.xlu0 %755 }
 0x1c5   : > { %v761_v43 = vadd.f32 %v756_v48, %v747_v25  ;;  %v734_v60 = vadd.f32 %v730_v47, %v720_v56 }
 0x1c8   : > { %v744_v50 = vpop.permute.xlu1 %743  ;;  %v770_v53 = vpop.permute.xlu0 %769 }
 0x1c9   : > { %v775_v57 = vadd.f32 %v770_v53, %v761_v43  ;;  %v748_v62 = vadd.f32 %v744_v50, %v734_v60 }
 0x1cc   : > { %v758_v58 = vpop.permute.xlu1 %757  ;;  %v784_v59 = vpop.permute.xlu0 %783 }
 0x1cd   : > { %v789_v61 = vadd.f32 %v784_v59, %v775_v57  ;;  %v762_v2 = vadd.f32 %v758_v58, %v748_v62 }
 0x1cf   : > { %v797_v63 = vadd.f32 %v795_v44, %v789_v61 }
 0x1d0   : > { %v772_v0 = vpop.permute.xlu1 %771  ;;  %v806_v52 = vpop.permute.xlu0 %805 }
 0x1d1   : > { %v776_v4 = vadd.f32 %v772_v0, %v762_v2  ;;  %v811_v13 = vadd.f32 %v806_v52, %v797_v63 }
 0x1d4   : > { %v786_v5 = vpop.permute.xlu1 %785  ;;  %v820_v23 = vpop.permute.xlu0 %819 }
 0x1d5   : > { %v790_v6 = vadd.f32 %v786_v5, %v776_v4  ;;  %v825_v3 = vadd.f32 %v820_v23, %v811_v13 }
 0x1d7   : > { %v798_v8 = vadd.f32 %v796_v7, %v790_v6 }
 0x1d8   : > { %v808_v9 = vpop.permute.xlu1 %807  ;;  %v834_v12 = vpop.permute.xlu0 %833 }
 0x1d9   : > { %v839_v17 = vadd.f32 %v834_v12, %v825_v3  ;;  %v812_v20 = vadd.f32 %v808_v9, %v798_v8 }
 0x1dc   : > { %v822_v14 = vpop.permute.xlu1 %821  ;;  %v848_v16 = vpop.permute.xlu0 %847 }
 0x1dd   : > { %v853_v19 = vadd.f32 %v848_v16, %v839_v17  ;;  %v826_v24 = vadd.f32 %v822_v14, %v812_v20 }
 0x1e0   : > { %v836_v15 = vpop.permute.xlu1 %835  ;;  %v862_v18 = vpop.permute.xlu0 %861 }
 0x1e1   : > { %v867_v1 = vadd.f32 %v862_v18, %v853_v19  ;;  %v840_v31 = vadd.f32 %v836_v15, %v826_v24 }
 0x1e4   : > { %v850_v21 = vpop.permute.xlu1 %849  ;;  %v876_v22 = vpop.permute.xlu0 %875 }
 0x1e5   : > { %v881_v26 = vadd.f32 %v876_v22, %v867_v1  ;;  %v854_v28 = vadd.f32 %v850_v21, %v840_v31 }
 0x1e7   : > { %v1055_v33 = vmul.f32 -1.442695, %v881_v26 }
 0x1e8   : > { %v864_v27 = vpop.permute.xlu1 %863 }
 0x1e9   : > { %1133 = vpow2.f32 %v1055_v33  ;;  %v868_v29 = vadd.f32 %v864_v27, %v854_v28 }
 0x1ec   : > { %v878_v30 = vpop.permute.xlu1 %877 }
 0x1ed   : > { %v882_v32 = vadd.f32 %v878_v30, %v868_v29 }
 0x1ef   : > { %v1056_v10 = vmul.f32 -1.442695, %v882_v32 }
 0x1f1   : > { %1135 = vpow2.f32 %v1056_v10 }
 0x1f6   : > { %v1134_v11 = vpop.eup %1133 }
 0x1f7   : > { %v889_v34 = vadd.f32 1.0, %v1134_v11 }
 0x1f9   : > { %1137 = vrcp.f32 %v889_v34 }
 0x1fe   : > { %v1136_v35 = vpop.eup %1135 }
 0x1ff   : > { %v890_v36 = vadd.f32 1.0, %v1136_v35 }
 0x201   : > { %1139 = vrcp.f32 %v890_v36 }
 0x206   : > { %v1138_v37 = vpop.eup %1137 }
 0x207   : > { %895 = vst.msk [vmem:[%s175_s19] sm:$0xff] %vm192_vm0, %v1138_v37 }
 0x20e   : > { %v1140_v51 = vpop.eup %1139 }
 0x20f   : > { %896 = vst.msk [vmem:[%s175_s19 + $0x8] sm:$0xff] %vm192_vm0, %v1140_v51 }
 0x210   : > { %1197 = shalt.err (!%p1194_p1)
}
 0x211   : > { %s1198_s3 = scalar_lea.hbm %s1734_s29, 256  ;;  %s1202_s26 = scalar_lea.hbm %s1782_s2, 512 }
 0x212   : > { %p1199_p4 = scmp.ne.s32.totalorder %s1734_s29, %s1198_s3  ;;  %p1203_p6 = scmp.lt.s32.totalorder %s1734_s29, %s1782_s2 }
 0x213   : > { %p1204_p13 = scmp.lt.s32.totalorder %s1202_s26, %s1198_s3 }
 0x214   : > { %p1200_p11 = pnand %p1199_p4, %p1798_p0 }
 0x215   : > { %p1205_p3 = por %p1204_p13, %p1203_p6 }
 0x216   : > { %p1201_p5 = pneg %p1200_p11 }
 0x218   : > { %p1206_p12 = pnand %p1205_p3, %p1201_p5 }
 0x21a   : > { %1209 = shalt.err (!%p1206_p12)
}
 0x21b   : > { %s1267_s4 = smov 128   ;;  %s1268_s6 = smov 8  }
 0x21c   : > { %1070 = dma.vmem_to_hbm [thread:$0]  (%p1798_p0), %s1736_s25, 256, %s1734_s29, %s898_s7, %s1267_s4, %s1267_s4, %s1268_s6  }
 0x21d PF: > { %s926_s19 = sand.u32 1, %s1240_s9   ;;  %p1799_p2 = scmp.ne.s32.totalorder %s1790_s22, 0 }
 0x21e   : > { %p1800_p7 = scmp.ge.s32.totalorder %s1252_s12, 2  ;;  %s927_s24 = scalar_lea.sflag [#allocation5], %s926_s19 }
 0x220   : > { %p1081_p8 = pnand %p1800_p7, %p1799_p2 }
 0x222   : > { %p1082_p9 = pneg %p1081_p8 }
 0x224   : > { %1235 = dma.done.wait (%p1082_p9), %s927_s24, 256  }
 0x225   : > { %1237 = vsyncadd (%p1082_p9), %s927_s24, 4294967040  ;;  %p16_p10 = scmp.ge.s32.totalorder %s1309_s15, 4   ;;  %s1801_s9 = smov %s1244_s10 }
 0x226   : > { %s1802_s10 = smov %s1248_s11  ;;  %s1803_s11 = smov %s1321_s18 }
 0x227   : > { %s1804_s12 = smov %s1309_s15  ;;  %18 = sbr.rel (!%p16_p10) target bundleno = 6 (0x6), region = 78 }
 0x22c   :  { %932 = vsyncpa [#allocation4], 1 }
 0x22d   :  { %934 = vsyncpa [#allocation4 + $0x1], 1 }
 0x22e   :  { %935 = vsyncpa [#allocation5], 1 }
 0x22f   :  { %937 = vsyncpa [#allocation5 + $0x1], 1 }
 0x230   :  { %938 = vsyncpa [#allocation6], 1 }
 0x231   :  { %940 = vsyncpa [#allocation6 + $0x1], 1 }

</bundles_post_ra>
